<compile_context>
chip_gen: v7x
topology: tpu7x:2x2x1
jax: 0.10.0
libtpu: 0.0.40
codegen_flags: <defaults>
</compile_context>

<pallas_src>
import functools

import jax
import jax.numpy as jnp
from jax import lax
from jax.experimental import pallas as pl
from jax.experimental.pallas import tpu as pltpu


_CONTRACT_LAST = (((1,), (1,)), ((), ()))  # contract last dim of both operands

_TK_CAP = 8192                          # max feature-chunk elements (128-multiple)
_INPUT_VMEM_BUDGET = 8 * 1024 * 1024    # bytes for double-buffered input tiles


def _round_up(x, mult):
    return -(-x // mult) * mult


def _chunk_stats(t_blk, s_blk):
    """Per-chunk Gram blocks and squared-norm partial sums (all f32).

    Returns gxx (m,m), gyy (n,n), gxy (m,n), sqx_c (m,1), sqx_r (1,m),
    sqy_c (n,1), sqy_r (1,n).  Row-oriented norms are produced with a tiny
    ones(1,TK) matmul so no transpose / relayout / diag mask is needed later.
    """
    tk = t_blk.shape[1]
    tf = t_blk.astype(jnp.float32)
    sf = s_blk.astype(jnp.float32)
    tt = tf * tf
    ss = sf * sf
    ones_row = jnp.ones((1, tk), jnp.float32)

    gxx = lax.dot_general(t_blk, t_blk, _CONTRACT_LAST,
                          preferred_element_type=jnp.float32)
    gyy = lax.dot_general(s_blk, s_blk, _CONTRACT_LAST,
                          preferred_element_type=jnp.float32)
    gxy = lax.dot_general(t_blk, s_blk, _CONTRACT_LAST,
                          preferred_element_type=jnp.float32)
    sqx_c = jnp.sum(tt, axis=1, keepdims=True)
    sqy_c = jnp.sum(ss, axis=1, keepdims=True)
    sqx_r = lax.dot_general(ones_row, tt, _CONTRACT_LAST,
                            preferred_element_type=jnp.float32)
    sqy_r = lax.dot_general(ones_row, ss, _CONTRACT_LAST,
                            preferred_element_type=jnp.float32)
    return gxx, gyy, gxy, sqx_c, sqx_r, sqy_c, sqy_r


def _mmd_from_stats(gxx, gyy, gxy, sqx_c, sqx_r, sqy_c, sqy_r,
                    sigma_list, m, n):
    """sqrt(relu(mmd2)) from Gram blocks + squared norms (biased estimator)."""
    # Pairwise squared distances; clamp tiny negatives from cancellation.
    e_xx = jnp.maximum(sqx_c + sqx_r - 2.0 * gxx, 0.0)
    e_yy = jnp.maximum(sqy_c + sqy_r - 2.0 * gyy, 0.0)
    e_xy = jnp.maximum(sqx_c + sqy_r - 2.0 * gxy, 0.0)

    # Mixed RBF kernel: accumulate elementwise over sigmas (static unroll),
    # reduce each block once.
    k_xx = jnp.zeros_like(e_xx)
    k_yy = jnp.zeros_like(e_yy)
    k_xy = jnp.zeros_like(e_xy)
    for sigma in sigma_list:
        gamma = 1.0 / (2.0 * sigma * sigma)
        k_xx = k_xx + jnp.exp(-gamma * e_xx)
        k_yy = k_yy + jnp.exp(-gamma * e_yy)
        k_xy = k_xy + jnp.exp(-gamma * e_xy)

    # Biased estimator: mean(Kxx) + mean(Kyy) - 2*mean(Kxy), scalar weights only.
    mmd2 = (jnp.sum(k_xx) * (1.0 / (m * m))
            + jnp.sum(k_yy) * (1.0 / (n * n))
            - jnp.sum(k_xy) * (2.0 / (m * n)))
    # relu then sqrt.
    return jnp.sqrt(jnp.maximum(mmd2, 0.0))


def _mmd_single_kernel(t_ref, s_ref, o_ref, *, sigma_list, m, n):
    """Small-problem fast path: one step, no grid, no accumulator scratch."""
    stats = _chunk_stats(t_ref[...], s_ref[...])
    o_ref[0] = _mmd_from_stats(*stats, sigma_list, m, n)


def _mmd_chunk_kernel(t_ref, s_ref, o_ref,
                      gxx_acc, gyy_acc, gxy_acc,
                      sqx_c_acc, sqx_r_acc, sqy_c_acc, sqy_r_acc,
                      *, sigma_list, m, n):
    k = pl.program_id(0)

    # NOTE: correctness of this zero-init relies on the D axis being a
    # sequential ("arbitrary") reduction axis on a single core; do not mark it
    # "parallel" without per-core partial accumulators.
    @pl.when(k == 0)
    def _init():
        gxx_acc[...] = jnp.zeros_like(gxx_acc)
        gyy_acc[...] = jnp.zeros_like(gyy_acc)
        gxy_acc[...] = jnp.zeros_like(gxy_acc)
        sqx_c_acc[...] = jnp.zeros_like(sqx_c_acc)
        sqx_r_acc[...] = jnp.zeros_like(sqx_r_acc)
        sqy_c_acc[...] = jnp.zeros_like(sqy_c_acc)
        sqy_r_acc[...] = jnp.zeros_like(sqy_r_acc)

    gxx, gyy, gxy, sqx_c, sqx_r, sqy_c, sqy_r = _chunk_stats(
        t_ref[...], s_ref[...])
    gxx_acc[...] += gxx
    gyy_acc[...] += gyy
    gxy_acc[...] += gxy
    sqx_c_acc[...] += sqx_c
    sqx_r_acc[...] += sqx_r
    sqy_c_acc[...] += sqy_c
    sqy_r_acc[...] += sqy_r

    @pl.when(k == pl.num_programs(0) - 1)
    def _finalize():
        o_ref[0] = _mmd_from_stats(
            gxx_acc[...], gyy_acc[...], gxy_acc[...],
            sqx_c_acc[...], sqx_r_acc[...], sqy_c_acc[...], sqy_r_acc[...],
            sigma_list, m, n)


def _pick_tk(d, m, n, itemsize, max_chunk_elems):
    """Lane-aligned feature-chunk size bounded by the VMEM input budget."""
    d128 = _round_up(d, 128)
    budget_tk = _INPUT_VMEM_BUDGET // (2 * (m + n) * itemsize)  # 2x double-buffer
    tk = min(d128, int(max_chunk_elems), int(budget_tk))
    tk = max(128, (tk // 128) * 128)
    return tk


def mmd_loss(target, source, *, base=1.0, sigma_list=(1.0, 2.0, 10.0),
             cast_to_bf16=False,
             max_chunk_elems=_TK_CAP,
             fast_path_max_bytes=4 * 1024 * 1024):
    """MMDLoss.forward: Target, Source -> scalar sqrt(relu(mmd2))."""
    sigmas = tuple(float(s) / float(base) for s in sigma_list)

    # Glue: flatten to (batch, features). Optional bf16 cast halves HBM bytes
    # on the D-streaming phase (loosen comparison tolerances if enabled).
    t = target.reshape(target.shape[0], -1)
    s = source.reshape(source.shape[0], -1)
    if cast_to_bf16:
        t = t.astype(jnp.bfloat16)
        s = s.astype(jnp.bfloat16)
    m, d = t.shape
    n, d2 = s.shape
    assert d == d2, "Target/Source must flatten to the same feature dim"
    itemsize = t.dtype.itemsize

    # ---- small-problem fast path: one step, whole inputs resident in VMEM.
    if (m + n) * d * itemsize <= fast_path_max_bytes:
        kernel = functools.partial(_mmd_single_kernel,
                                   sigma_list=sigmas, m=m, n=n)
        out = pl.pallas_call(
            kernel,
            out_shape=jax.ShapeDtypeStruct((1,), jnp.float32),
            in_specs=[pl.BlockSpec(memory_space=pltpu.MemorySpace.VMEM),
                      pl.BlockSpec(memory_space=pltpu.MemorySpace.VMEM)],
            out_specs=pl.BlockSpec(memory_space=pltpu.MemorySpace.SMEM),
        )(t, s)
        return out[0]

    # ---- chunked path: D is a pipelined reduction grid axis.
    tk = _pick_tk(d, m, n, itemsize, max_chunk_elems)
    d_pad = _round_up(d, tk)
    if d_pad != d:
        # Zero padding leaves the Gram matrices and squared norms unchanged
        # and keeps every chunk lane-aligned / fully pipelined.
        t = jnp.pad(t, ((0, 0), (0, d_pad - d)))
        s = jnp.pad(s, ((0, 0), (0, d_pad - d)))
    grid = (d_pad // tk,)

    # TODO(synk): at production D on v7x, split this reduction across the two
    # TensorCores (leading "parallel" axis + per-core partial accumulators).
    kernel = functools.partial(_mmd_chunk_kernel, sigma_list=sigmas, m=m, n=n)

    out = pl.pallas_call(
        kernel,
        out_shape=jax.ShapeDtypeStruct((1,), jnp.float32),
        grid_spec=pltpu.PrefetchScalarGridSpec(
            num_scalar_prefetch=0,
            grid=grid,
            in_specs=[
                pl.BlockSpec((m, tk), lambda k: (0, k)),
                pl.BlockSpec((n, tk), lambda k: (0, k)),
            ],
            out_specs=pl.BlockSpec(memory_space=pltpu.MemorySpace.SMEM),
            scratch_shapes=[
                pltpu.VMEM((m, m), jnp.float32),   # Gram xx
                pltpu.VMEM((n, n), jnp.float32),   # Gram yy
                pltpu.VMEM((m, n), jnp.float32),   # Gram xy
                pltpu.VMEM((m, 1), jnp.float32),   # |x|^2 column
                pltpu.VMEM((1, m), jnp.float32),   # |x|^2 row
                pltpu.VMEM((n, 1), jnp.float32),   # |y|^2 column
                pltpu.VMEM((1, n), jnp.float32),   # |y|^2 row
            ],
        ),
        compiler_params=pltpu.CompilerParams(
            # D is a sequential reduction axis (accumulators live in scratch).
            dimension_semantics=("arbitrary",),
            # Explicit scoped-VMEM budget: double-buffered (m+n, tk) inputs
            # (<= _INPUT_VMEM_BUDGET) + tiny scratch + headroom.  32 MiB is
            # safe on v5e/v6e (128 MiB physical) and v7x (64 MiB physical).
            vmem_limit_bytes=32 * 1024 * 1024,
        ),
    )(t, s)
    return out[0]


def _mmd_loss_ref(target, source, *, base=1.0, sigma_list=(1.0, 2.0, 10.0)):
    """Pure-JAX reference for the correctness check."""
    sigmas = [float(s) / float(base) for s in sigma_list]
    x = target.reshape(target.shape[0], -1).astype(jnp.float32)
    y = source.reshape(source.shape[0], -1).astype(jnp.float32)
    m, n = x.shape[0], y.shape[0]
    xx = x @ x.T
    yy = y @ y.T
    xy = x @ y.T
    x_sq = jnp.sum(x * x, axis=-1, keepdims=True)
    y_sq = jnp.sum(y * y, axis=-1, keepdims=True)
    e_xx = x_sq + x_sq.T - 2.0 * xx
    e_yy = y_sq + y_sq.T - 2.0 * yy
    e_xy = x_sq + y_sq.T - 2.0 * xy
    k_xx = sum(jnp.sum(jnp.exp(-e_xx / (2 * s * s))) for s in sigmas)
    k_yy = sum(jnp.sum(jnp.exp(-e_yy / (2 * s * s))) for s in sigmas)
    k_xy = sum(jnp.sum(jnp.exp(-e_xy / (2 * s * s))) for s in sigmas)
    mmd2 = k_xx / (m * m) + k_yy / (n * n) - 2.0 * k_xy / (m * n)
    return jnp.sqrt(jax.nn.relu(mmd2))


if __name__ == "__main__":
    key = jax.random.PRNGKey(0)
    k1, k2, k3, k4 = jax.random.split(key, 4)

    # Feature-map-like inputs (NCHW in the torch module); flattened to (N, D).
    target = jax.random.normal(k1, (8, 4, 16, 16), dtype=jnp.float32)
    source = 0.5 * jax.random.normal(k2, (8, 4, 16, 16), dtype=jnp.float32) + 0.2

    # Fast path (whole problem resident in VMEM, single step).
    out = jax.block_until_ready(mmd_loss(target, source))
    ref = jax.block_until_ready(_mmd_loss_ref(target, source))
    assert jnp.allclose(out, ref, rtol=1e-4, atol=1e-5), (out, ref)

    # Chunked path (non-128-aligned D -> zero padding, 2 reduction steps).
    target2 = jax.random.normal(k3, (8, 4, 10, 10), dtype=jnp.float32)
    source2 = 0.3 * jax.random.normal(k4, (8, 4, 10, 10), dtype=jnp.float32) - 0.1
    out2 = jax.block_until_ready(
        mmd_loss(target2, source2, max_chunk_elems=256, fast_path_max_bytes=0))
    ref2 = jax.block_until_ready(_mmd_loss_ref(target2, source2))
    assert jnp.allclose(out2, ref2, rtol=1e-4, atol=1e-5), (out2, ref2)

    print("KERNEL_OK")
</pallas_src>

<mosaic_0001>
module attributes {stable_mosaic.version = 11 : i64} {
  func.func @_mmd_single_kernel(%arg0: memref<8x1024xf32, #tpu.memory_space<vmem>>, %arg1: memref<8x1024xf32, #tpu.memory_space<vmem>>, %arg2: memref<1xf32, #tpu.memory_space<smem>>) attributes {dimension_semantics = [], scalar_prefetch = 0 : i64, scratch_operands = 0 : i64, tpu.core_type = #tpu.core_type<tc>} {
    %c0 = arith.constant 0 : index
    %c0_0 = arith.constant 0 : index
    %0 = vector.load %arg0[%c0, %c0_0] : memref<8x1024xf32, #tpu.memory_space<vmem>>, vector<8x1024xf32>
    %c0_1 = arith.constant 0 : index
    %c0_2 = arith.constant 0 : index
    %1 = vector.load %arg1[%c0_1, %c0_2] : memref<8x1024xf32, #tpu.memory_space<vmem>>, vector<8x1024xf32>
    %2 = arith.mulf %0, %0 : vector<8x1024xf32>
    %3 = arith.mulf %1, %1 : vector<8x1024xf32>
    %cst = arith.constant 1.000000e+00 : f32
    %4 = vector.broadcast %cst : f32 to vector<1x1024xf32>
    %cst_3 = arith.constant dense<0.000000e+00> : vector<8x8xf32>
    %5 = tpu.matmul %0, %0, %cst_3 {dimension_numbers = #tpu.dot_dimension_numbers<[1], [1], [0], [0], [0, 0, 1, 0], [], []>} : vector<8x1024xf32>, vector<8x1024xf32>, vector<8x8xf32> -> vector<8x8xf32>
    %cst_4 = arith.constant dense<0.000000e+00> : vector<8x8xf32>
    %6 = tpu.matmul %1, %1, %cst_4 {dimension_numbers = #tpu.dot_dimension_numbers<[1], [1], [0], [0], [0, 0, 1, 0], [], []>} : vector<8x1024xf32>, vector<8x1024xf32>, vector<8x8xf32> -> vector<8x8xf32>
    %cst_5 = arith.constant dense<0.000000e+00> : vector<8x8xf32>
    %7 = tpu.matmul %0, %1, %cst_5 {dimension_numbers = #tpu.dot_dimension_numbers<[1], [1], [0], [0], [0, 0, 1, 0], [], []>} : vector<8x1024xf32>, vector<8x1024xf32>, vector<8x8xf32> -> vector<8x8xf32>
    %cst_6 = arith.constant dense<0.000000e+00> : vector<8xf32>
    %8 = vector.multi_reduction <add>, %2, %cst_6 [1] : vector<8x1024xf32> to vector<8xf32>
    %9 = vector.shape_cast %8 : vector<8xf32> to vector<8x1xf32>
    %cst_7 = arith.constant dense<0.000000e+00> : vector<8xf32>
    %10 = vector.multi_reduction <add>, %3, %cst_7 [1] : vector<8x1024xf32> to vector<8xf32>
    %11 = vector.shape_cast %10 : vector<8xf32> to vector<8x1xf32>
    %cst_8 = arith.constant dense<0.000000e+00> : vector<1x8xf32>
    %12 = tpu.matmul %4, %2, %cst_8 {dimension_numbers = #tpu.dot_dimension_numbers<[1], [1], [0], [0], [0, 0, 1, 0], [], []>} : vector<1x1024xf32>, vector<8x1024xf32>, vector<1x8xf32> -> vector<1x8xf32>
    %cst_9 = arith.constant dense<0.000000e+00> : vector<1x8xf32>
    %13 = tpu.matmul %4, %3, %cst_9 {dimension_numbers = #tpu.dot_dimension_numbers<[1], [1], [0], [0], [0, 0, 1, 0], [], []>} : vector<1x1024xf32>, vector<8x1024xf32>, vector<1x8xf32> -> vector<1x8xf32>
    %14 = vector.broadcast %9 : vector<8x1xf32> to vector<8x8xf32>
    %15 = vector.broadcast %12 : vector<1x8xf32> to vector<8x8xf32>
    %16 = arith.addf %14, %15 : vector<8x8xf32>
    %cst_10 = arith.constant 2.000000e+00 : f32
    %17 = vector.broadcast %cst_10 : f32 to vector<8x8xf32>
    %18 = arith.mulf %17, %5 : vector<8x8xf32>
    %19 = arith.subf %16, %18 : vector<8x8xf32>
    %cst_11 = arith.constant 0.000000e+00 : f32
    %20 = vector.broadcast %cst_11 : f32 to vector<8x8xf32>
    %21 = arith.maximumf %19, %20 : vector<8x8xf32>
    %22 = vector.broadcast %11 : vector<8x1xf32> to vector<8x8xf32>
    %23 = vector.broadcast %13 : vector<1x8xf32> to vector<8x8xf32>
    %24 = arith.addf %22, %23 : vector<8x8xf32>
    %cst_12 = arith.constant 2.000000e+00 : f32
    %25 = vector.broadcast %cst_12 : f32 to vector<8x8xf32>
    %26 = arith.mulf %25, %6 : vector<8x8xf32>
    %27 = arith.subf %24, %26 : vector<8x8xf32>
    %cst_13 = arith.constant 0.000000e+00 : f32
    %28 = vector.broadcast %cst_13 : f32 to vector<8x8xf32>
    %29 = arith.maximumf %27, %28 : vector<8x8xf32>
    %30 = vector.broadcast %9 : vector<8x1xf32> to vector<8x8xf32>
    %31 = vector.broadcast %13 : vector<1x8xf32> to vector<8x8xf32>
    %32 = arith.addf %30, %31 : vector<8x8xf32>
    %cst_14 = arith.constant 2.000000e+00 : f32
    %33 = vector.broadcast %cst_14 : f32 to vector<8x8xf32>
    %34 = arith.mulf %33, %7 : vector<8x8xf32>
    %35 = arith.subf %32, %34 : vector<8x8xf32>
    %cst_15 = arith.constant 0.000000e+00 : f32
    %36 = vector.broadcast %cst_15 : f32 to vector<8x8xf32>
    %37 = arith.maximumf %35, %36 : vector<8x8xf32>
    %cst_16 = arith.constant 0.000000e+00 : f32
    %38 = vector.broadcast %cst_16 : f32 to vector<8x8xf32>
    %cst_17 = arith.constant 0.000000e+00 : f32
    %39 = vector.broadcast %cst_17 : f32 to vector<8x8xf32>
    %cst_18 = arith.constant 0.000000e+00 : f32
    %40 = vector.broadcast %cst_18 : f32 to vector<8x8xf32>
    %cst_19 = arith.constant -5.000000e-01 : f32
    %41 = vector.broadcast %cst_19 : f32 to vector<8x8xf32>
    %42 = arith.mulf %41, %21 : vector<8x8xf32>
    %43 = math.exp %42 : vector<8x8xf32>
    %44 = arith.addf %38, %43 : vector<8x8xf32>
    %cst_20 = arith.constant -5.000000e-01 : f32
    %45 = vector.broadcast %cst_20 : f32 to vector<8x8xf32>
    %46 = arith.mulf %45, %29 : vector<8x8xf32>
    %47 = math.exp %46 : vector<8x8xf32>
    %48 = arith.addf %39, %47 : vector<8x8xf32>
    %cst_21 = arith.constant -5.000000e-01 : f32
    %49 = vector.broadcast %cst_21 : f32 to vector<8x8xf32>
    %50 = arith.mulf %49, %37 : vector<8x8xf32>
    %51 = math.exp %50 : vector<8x8xf32>
    %52 = arith.addf %40, %51 : vector<8x8xf32>
    %cst_22 = arith.constant -1.250000e-01 : f32
    %53 = vector.broadcast %cst_22 : f32 to vector<8x8xf32>
    %54 = arith.mulf %53, %21 : vector<8x8xf32>
    %55 = math.exp %54 : vector<8x8xf32>
    %56 = arith.addf %44, %55 : vector<8x8xf32>
    %cst_23 = arith.constant -1.250000e-01 : f32
    %57 = vector.broadcast %cst_23 : f32 to vector<8x8xf32>
    %58 = arith.mulf %57, %29 : vector<8x8xf32>
    %59 = math.exp %58 : vector<8x8xf32>
    %60 = arith.addf %48, %59 : vector<8x8xf32>
    %cst_24 = arith.constant -1.250000e-01 : f32
    %61 = vector.broadcast %cst_24 : f32 to vector<8x8xf32>
    %62 = arith.mulf %61, %37 : vector<8x8xf32>
    %63 = math.exp %62 : vector<8x8xf32>
    %64 = arith.addf %52, %63 : vector<8x8xf32>
    %cst_25 = arith.constant -5.000000e-03 : f32
    %65 = vector.broadcast %cst_25 : f32 to vector<8x8xf32>
    %66 = arith.mulf %65, %21 : vector<8x8xf32>
    %67 = math.exp %66 : vector<8x8xf32>
    %68 = arith.addf %56, %67 : vector<8x8xf32>
    %cst_26 = arith.constant -5.000000e-03 : f32
    %69 = vector.broadcast %cst_26 : f32 to vector<8x8xf32>
    %70 = arith.mulf %69, %29 : vector<8x8xf32>
    %71 = math.exp %70 : vector<8x8xf32>
    %72 = arith.addf %60, %71 : vector<8x8xf32>
    %cst_27 = arith.constant -5.000000e-03 : f32
    %73 = vector.broadcast %cst_27 : f32 to vector<8x8xf32>
    %74 = arith.mulf %73, %37 : vector<8x8xf32>
    %75 = math.exp %74 : vector<8x8xf32>
    %76 = arith.addf %64, %75 : vector<8x8xf32>
    %77 = vector.shape_cast %68 : vector<8x8xf32> to vector<1x8x8xf32>
    %cst_28 = arith.constant dense<0.000000e+00> : vector<1xf32>
    %78 = vector.multi_reduction <add>, %77, %cst_28 [1, 2] : vector<1x8x8xf32> to vector<1xf32>
    %79 = vector.shape_cast %78 : vector<1xf32> to vector<1x1x1xf32>
    %80 = vector.extract %79[0, 0, 0] : f32 from vector<1x1x1xf32>
    %cst_29 = arith.constant 1.562500e-02 : f32
    %81 = arith.mulf %80, %cst_29 : f32
    %82 = vector.shape_cast %72 : vector<8x8xf32> to vector<1x8x8xf32>
    %cst_30 = arith.constant dense<0.000000e+00> : vector<1xf32>
    %83 = vector.multi_reduction <add>, %82, %cst_30 [1, 2] : vector<1x8x8xf32> to vector<1xf32>
    %84 = vector.shape_cast %83 : vector<1xf32> to vector<1x1x1xf32>
    %85 = vector.extract %84[0, 0, 0] : f32 from vector<1x1x1xf32>
    %cst_31 = arith.constant 1.562500e-02 : f32
    %86 = arith.mulf %85, %cst_31 : f32
    %87 = arith.addf %81, %86 : f32
    %88 = vector.shape_cast %76 : vector<8x8xf32> to vector<1x8x8xf32>
    %cst_32 = arith.constant dense<0.000000e+00> : vector<1xf32>
    %89 = vector.multi_reduction <add>, %88, %cst_32 [1, 2] : vector<1x8x8xf32> to vector<1xf32>
    %90 = vector.shape_cast %89 : vector<1xf32> to vector<1x1x1xf32>
    %91 = vector.extract %90[0, 0, 0] : f32 from vector<1x1x1xf32>
    %cst_33 = arith.constant 3.125000e-02 : f32
    %92 = arith.mulf %91, %cst_33 : f32
    %93 = arith.subf %87, %92 : f32
    %cst_34 = arith.constant 0.000000e+00 : f32
    %94 = arith.maximumf %93, %cst_34 : f32
    %95 = math.sqrt %94 : f32
    %c0_35 = arith.constant 0 : index
    %96 = memref.load %arg2[%c0_35] : memref<1xf32, #tpu.memory_space<smem>>
    memref.store %95, %arg2[%c0_35] : memref<1xf32, #tpu.memory_space<smem>>
    return
  }
}

</mosaic_0001>

<bundles_post_ra>
// kernel: tpu_custom_call.1
= control target key start
LH: loop header
LB: loop body
LE: loop exit
PB: predicated region body
PF: predicated region fallthrough
CT: control target
= control target key end

     0   :  { %7 = vsyncpa [#allocation3], 0  ;;  %s1866_s0 = inlined_call_operand.hbm [shape: f32[8,1024], index: 0, kind: input, shape index: {}]   ;;  %s1867_s1 = inlined_call_operand.hbm [shape: f32[8,1024], index: 1, kind: input, shape index: {}]   ;;  %s1868_s2 = inlined_call_operand.hbm [shape: f32[1], index: 2, kind: output, shape index: {}]  }
   0x1   :  { %8 = vsyncpa [#allocation6], 0 }
   0x2   :  { %9 = vsyncpa [#allocation4], 0  ;;  %s1727_s9 = smov [#allocation2]   ;;  %s1728_s11 = smov [#allocation5]  }
   0x3   :  { %s16_s10 = sshll.u32 %s1727_s9, 4  ;;  %s26_s12 = sshll.u32 %s1728_s11, 4  ;;  %s17_s10 = int_to_ptr.vmem [resolvable:$true] %s16_s10  ;;  %s27_s12 = int_to_ptr.vmem [resolvable:$true] %s26_s12 }
   0x4   :  { %s1667_s15 = scalar_lea.hbm %s1866_s0, 1024 }
   0x5   :  { %p1668_p0 = scmp.ne.s32.totalorder %s1866_s0, %s1667_s15  ;;  %p1671_p1 = scmp.lt.u32.totalorder %s1667_s15, %s1866_s0 }
   0x7   :  { %p1673_p2 = pnand %p1671_p1, %p1668_p0 }
   0x9   :  { %1676 = shalt.err (!%p1673_p2)
}
   0xa   :  { %s1677_s20 = scalar_lea.vmem %s17_s10, 1024  ;;  %p1682_p4 = scmp.lt.s32.totalorder %s17_s10, %s17_s10 }
   0xb   :  { %p1678_p3 = scmp.ne.s32.totalorder %s17_s10, %s1677_s20  ;;  %p1683_p5 = scmp.lt.s32.totalorder %s1677_s20, %s1677_s20 }
   0xd   :  { %p1684_p6 = por %p1683_p5, %p1682_p4 }
   0xf   :  { %p1685_p7 = pnand %p1684_p6, %p1678_p3 }
  0x11   :  { %1688 = shalt.err (!%p1685_p7)
}
  0x12   :  { %19 = dma.hbm_to_vmem [thread:$0]  %s1866_s0, 1024, %s17_s10, [#allocation3]  }
  0x13   :  { %s1689_s25 = scalar_lea.hbm %s1867_s1, 1024 }
  0x14   :  { %p1690_p8 = scmp.ne.s32.totalorder %s1867_s1, %s1689_s25  ;;  %p1693_p9 = scmp.lt.u32.totalorder %s1689_s25, %s1867_s1 }
  0x16   :  { %p1695_p10 = pnand %p1693_p9, %p1690_p8 }
  0x18   :  { %1698 = shalt.err (!%p1695_p10)
}
  0x19   :  { %s1699_s30 = scalar_lea.vmem %s27_s12, 1024  ;;  %p1704_p12 = scmp.lt.s32.totalorder %s27_s12, %s27_s12 }
  0x1a   :  { %p1700_p11 = scmp.ne.s32.totalorder %s27_s12, %s1699_s30  ;;  %p1705_p13 = scmp.lt.s32.totalorder %s1699_s30, %s1699_s30 }
  0x1c   :  { %p1706_p0 = por %p1705_p13, %p1704_p12 }
  0x1e   :  { %p1707_p1 = pnand %p1706_p0, %p1700_p11 }
  0x20   :  { %1710 = shalt.err (!%p1707_p1)
}
  0x21   :  { %29 = dma.hbm_to_vmem [thread:$0]  %s1867_s1, 1024, %s27_s12, [#allocation6]  }
  0x22   :  { %1721 = dma.done.wait [#allocation3], 1024  }
  0x23   :  { %1722 = vsyncadd [#allocation3], 4294966272 }
  0x24   :  { %1723 = dma.done.wait [#allocation6], 1024  }
  0x25   :  { %1724 = vsyncadd [#allocation6], 4294966272  ;;  %v37_v0 = vld [vmem:[#allocation2 + $0x8] sm:$0xff]  ;;  %v36_v2 = vld [vmem:[#allocation2] sm:$0xff]  ;;  %v1729_v46 = vmov 1.0   ;;  %v1486_v56 = vlaneseq  ;;  %vm1542_vm0 = vcmask 64512  }
  0x26   :  { %v1771_v1 = vld [vmem:[#allocation2 + $0x28] sm:$0xff]  ;;  %68 = vmatprep.subr.mxu1 %v37_v0  ;;  %v1774_v3 = vmul.f32 %v36_v2, %v36_v2  ;;  %v1776_v4 = vld [vmem:[#allocation2 + $0x20] sm:$0xff]  ;;  %v39_v5 = vld [vmem:[#allocation2 + $0x18] sm:$0xff]  ;;  %v1778_v6 = vmul.f32 %v37_v0, %v37_v0  ;;  %132 = vmatprep.mubr.f32.mxu1 %v37_v0  ;;  %s1730_s11 = smov 0.0   ;;  %s1711_s16 = scalar_lea.hbm %s1868_s2, 16 }
  0x27   :  { %208 = vmatprep.subr.mxu0 %v1771_v1  ;;  %69 = vmatpush1.xpose.msra.mxu1 %v36_v2  ;;  %v1781_v7 = vld [vmem:[#allocation2 + $0x10] sm:$0xff]  ;;  %v1783_v8 = vld [vmem:[#allocation2 + $0x38] sm:$0xff]  ;;  %v45_v11 = vld [vmem:[#allocation5 + $0x8] sm:$0xff]  ;;  %v1800_v17 = vmul.f32 %v39_v5, %v39_v5  ;;  %v1813_v23 = vmul.f32 %v1776_v4, %v1776_v4  ;;  %v1820_v26 = vmul.f32 %v1771_v1, %v1771_v1  ;;  %v1487_v58 = vshrl.u32 %v1486_v56, 7  ;;  %p1712_p2 = scmp.ne.s32.totalorder %s1868_s2, %s1711_s16  ;;  %p1715_p3 = scmp.lt.u32.totalorder %s1711_s16, %s1868_s2 }
  0x28   :  { %209 = vmatpush1.xpose.msra.mxu0 %v1776_v4  ;;  %272 = vmatprep.mubr.f32.mxu0 %v1771_v1  ;;  %v1788_v9 = vmul.f32 %v1781_v7, %v1781_v7  ;;  %v1790_v10 = vld [vmem:[#allocation2 + $0x30] sm:$0xff]  ;;  %v44_v12 = vld [vmem:[#allocation5] sm:$0xff]  ;;  %v908_v13 = vadd.f32 %v1778_v6, %v1774_v3  ;;  %v1797_v15 = vmul.f32 %v45_v11, %v45_v11  ;;  %v47_v21 = vld [vmem:[#allocation5 + $0x18] sm:$0xff] }
  0x29   :  { %138 = vmatprep.subr.mxu1 %v39_v5  ;;  %278 = vmatprep.subr.mxu0 %v1783_v8  ;;  %v1795_v14 = vmul.f32 %v44_v12, %v44_v12  ;;  %v46_v16 = vld [vmem:[#allocation5 + $0x10] sm:$0xff]  ;;  %v1815_v24 = vmul.f32 %v47_v21, %v47_v21  ;;  %v48_v28 = vld [vmem:[#allocation5 + $0x20] sm:$0xff]  ;;  %v1828_v31 = vmul.f32 %v1790_v10, %v1790_v10  ;;  %v49_v35 = vld [vmem:[#allocation5 + $0x28] sm:$0xff]  ;;  %v1488_v59 = vsub.s32 0, %v1487_v58  ;;  %p1717_p4 = pnand %p1715_p3, %p1712_p2 }
  0x2a   :  { %133 = vmatmul.mubr.f32.vlgmr.msra.gmra.mrb[0].mxu1 %v36_v2  ;;  %v909_v18 = vadd.f32 %v908_v13, %v1788_v9  ;;  %v1805_v19 = vmul.f32 %v46_v16, %v46_v16  ;;  %v1824_v30 = vmul.f32 %v48_v28, %v48_v28  ;;  %v65_v36 = vmul.f32 %v49_v35, %v49_v35  ;;  %v50_v40 = vld [vmem:[#allocation5 + $0x30] sm:$0xff]  ;;  %v51_v43 = vld [vmem:[#allocation5 + $0x38] sm:$0xff] }
  0x2b   :  { %273 = vmatmul.mubr.f32.vlgmr.msra.gmra.mrb[0].mxu0 %v1776_v4  ;;  %139 = vmatpush1.xpose.msra.mxu1 %v1781_v7  ;;  %v917_v20 = vadd.f32 %v1797_v15, %v1795_v14  ;;  %v59_v37 = vmul.f32 %v1783_v8, %v1783_v8  ;;  %v66_v41 = vmul.f32 %v50_v40, %v50_v40 }
  0x2c   :  { %279 = vmatpush1.xpose.msra.mxu0 %v1790_v10  ;;  %202 = vmatprep.mubr.f32.mxu1 %v39_v5  ;;  %v910_v22 = vadd.f32 %v909_v18, %v1800_v17  ;;  %v67_v44 = vmul.f32 %v51_v43, %v51_v43 }
  0x2d   :  { %342 = vmatprep.mubr.f32.mxu0 %v1783_v8  ;;  %348 = vmatprep.subr.mxu1 %v45_v11  ;;  %v918_v25 = vadd.f32 %v917_v20, %v1805_v19 }
  0x2e   :  { %628 = vmatprep.subr.mxu0 %v45_v11  ;;  %v911_v27 = vadd.f32 %v910_v22, %v1813_v23 }
  0x2f   :  { %v919_v29 = vadd.f32 %v918_v25, %v1815_v24 }
  0x30   :  { %v912_v32 = vadd.f32 %v911_v27, %v1820_v26 }
  0x31   :  { %v920_v34 = vadd.f32 %v919_v29, %v1824_v30 }
  0x32   :  { %203 = vmatmul.mubr.f32.vlgmr.msra.gmra.mrb[0].mxu1 %v1781_v7  ;;  %v913_v33 = vadd.f32 %v912_v32, %v1828_v31 }
  0x33   :  { %343 = vmatmul.mubr.f32.vlgmr.msra.gmra.mrb[0].mxu0 %v1790_v10  ;;  %349 = vmatpush1.xpose.msra.mxu1 %v44_v12  ;;  %v921_v39 = vadd.f32 %v920_v34, %v65_v36 }
  0x34   :  { %629 = vmatpush1.xpose.msra.mxu0 %v44_v12  ;;  %412 = vmatprep.mubr.f32.mxu1 %v45_v11  ;;  %v914_v38 = vadd.f32 %v913_v33, %v59_v37 }
  0x35   :  { %692 = vmatprep.mubr.f32.mxu0 %v37_v0  ;;  %418 = vmatprep.subr.mxu1 %v47_v21  ;;  %v922_v42 = vadd.f32 %v921_v39, %v66_v41 }
  0x36   :  { %698 = vmatprep.subr.mxu0 %v47_v21  ;;  %413 = vmatmul.mubr.f32.vlgmr.msra.gmra.mrb[2].mxu1 %v44_v12 }
  0x37   :  { %693 = vmatmul.mubr.f32.vlgmr.msra.gmra.mrb[2].mxu0 %v36_v2  ;;  %419 = vmatpush1.xpose.msra.mxu1 %v46_v16  ;;  %v923_v45 = vadd.f32 %v922_v42, %v67_v44 }
  0x38   :  { %699 = vmatpush1.xpose.msra.mxu0 %v46_v16  ;;  %482 = vmatprep.mubr.f32.mxu1 %v47_v21 }
  0x39   :  { %762 = vmatprep.mubr.f32.mxu0 %v39_v5  ;;  %488 = vmatprep.subr.mxu1 %v49_v35 }
  0x3a   :  { %768 = vmatprep.subr.mxu0 %v49_v35  ;;  %915 = vadd.xlane.f32.xlu0 %v914_v38 }
  0x3e   :  { %483 = vmatmul.mubr.f32.vlgmr.msra.gmra.mrb[2].mxu1 %v46_v16  ;;  %924 = vadd.xlane.f32.xlu0 %v923_v45 }
  0x3f   :  { %763 = vmatmul.mubr.f32.vlgmr.msra.gmra.mrb[2].mxu0 %v1781_v7  ;;  %489 = vmatpush1.xpose.msra.mxu1 %v48_v28 }
  0x40   :  { %769 = vmatpush1.xpose.msra.mxu0 %v48_v28  ;;  %552 = vmatprep.mubr.f32.mxu1 %v49_v35 }
  0x41   :  { %832 = vmatprep.mubr.f32.mxu0 %v1771_v1  ;;  %558 = vmatprep.subr.mxu1 %v51_v43 }
  0x42   :  { %838 = vmatprep.subr.mxu0 %v51_v43 }
  0x46   :  { %553 = vmatmul.mubr.f32.vlgmr.msra.gmra.mrb[2].mxu1 %v48_v28 }
  0x47   :  { %833 = vmatmul.mubr.f32.vlgmr.msra.gmra.mrb[2].mxu0 %v1776_v4  ;;  %559 = vmatpush1.xpose.msra.mxu1 %v50_v40 }
  0x48   :  { %839 = vmatpush1.xpose.msra.mxu0 %v50_v40  ;;  %622 = vmatprep.mubr.f32.mxu1 %v51_v43 }
  0x49   :  { %902 = vmatprep.mubr.f32.mxu0 %v1783_v8  ;;  %926 = vmatprep.subr.mxu1 %v1778_v6 }
  0x4a   :  { %1206 = vmatprep.subr.mxu0 %v1797_v15 }
  0x4e   :  { %623 = vmatmul.mubr.f32.vlgmr.msra.gmra.mrb[2].mxu1 %v50_v40 }
  0x4f   :  { %903 = vmatmul.mubr.f32.vlgmr.msra.gmra.mrb[2].mxu0 %v1790_v10  ;;  %927 = vmatpush1.xpose.msra.mxu1 %v1774_v3 }
  0x50   :  { %1207 = vmatpush1.xpose.msra.mxu0 %v1795_v14  ;;  %990 = vmatprep.mubr.f32.mxu1 %v1729_v46 }
  0x51   :  { %1270 = vmatprep.mubr.f32.mxu0 %v1729_v46  ;;  %996 = vmatprep.subr.mxu1 %v1800_v17 }
  0x52   :  { %1276 = vmatprep.subr.mxu0 %v1815_v24  ;;  %991 = vmatmul.mubr.f32.vlgmr.msra.gmra.mrb[4].mxu1 %v1729_v46 }
  0x53   :  { %1271 = vmatmul.mubr.f32.vlgmr.msra.gmra.mrb[4].mxu0 %v1729_v46  ;;  %997 = vmatpush1.xpose.msra.mxu1 %v1788_v9 }
  0x54   :  { %1277 = vmatpush1.xpose.msra.mxu0 %v1805_v19  ;;  %1060 = vmatprep.mubr.f32.mxu1 %v1729_v46 }
  0x55   :  { %1340 = vmatprep.mubr.f32.mxu0 %v1729_v46  ;;  %1066 = vmatprep.subr.mxu1 %v1820_v26 }
  0x56   :  { %1346 = vmatprep.subr.mxu0 %v65_v36 }
  0x5a   :  { %1061 = vmatmul.mubr.f32.vlgmr.msra.gmra.mrb[4].mxu1 %v1729_v46 }
  0x5b   :  { %1341 = vmatmul.mubr.f32.vlgmr.msra.gmra.mrb[4].mxu0 %v1729_v46  ;;  %1067 = vmatpush1.xpose.msra.mxu1 %v1813_v23 }
  0x5c   :  { %1347 = vmatpush1.xpose.msra.mxu0 %v1824_v30  ;;  %1130 = vmatprep.mubr.f32.mxu1 %v1729_v46 }
  0x5d   :  { %1410 = vmatprep.mubr.f32.mxu0 %v1729_v46  ;;  %1136 = vmatprep.subr.mxu1 %v59_v37 }
  0x5e   :  { %1416 = vmatprep.subr.mxu0 %v67_v44 }
  0x62   :  { %1131 = vmatmul.mubr.f32.vlgmr.msra.gmra.mrb[4].mxu1 %v1729_v46 }
  0x63   :  { %1411 = vmatmul.mubr.f32.vlgmr.msra.gmra.mrb[4].mxu0 %v1729_v46  ;;  %1137 = vmatpush1.xpose.msra.mxu1 %v1828_v31 }
  0x64   :  { %1417 = vmatpush1.xpose.msra.mxu0 %v66_v41  ;;  %1200 = vmatprep.mubr.f32.mxu1 %v1729_v46 }
  0x65   :  { %1480 = vmatprep.mubr.f32.mxu0 %v1729_v46 }
  0x6a   :  { %1201 = vmatmul.mubr.f32.vlgmr.msra.gmra.mrb[4].mxu1 %v1729_v46 }
  0x6b   :  { %1481 = vmatmul.mubr.f32.vlgmr.msra.gmra.mrb[4].mxu0 %v1729_v46 }
  0xc7   :  { %v916_v57 = vpop.xlane.xlu0 %915 }
  0xcb   :  { %v925_v60 = vpop.xlane.xlu0 %924 }
 0x105   :  { %v204_v47 = vpop.f32.mrb[0].mxu1 }
 0x106   :  { %v344_v48 = vpop.f32.mrb[0].mxu0  ;;  %v206_v50 = vpop.f32.mrb[1].mxu1 }
 0x107   :  { %v1605_v49 = vadd.f32 %v344_v48, %v204_v47  ;;  %v346_v51 = vpop.f32.mrb[1].mxu0 }
 0x109   :  { %v1491_v3 = vmul.f32 2.0, %v1605_v49 }
 0x121   :  { %v624_v52 = vpop.f32.mrb[2].mxu1 }
 0x122   :  { %v904_v53 = vpop.f32.mrb[2].mxu0  ;;  %v626_v54 = vpop.f32.mrb[3].mxu1  ;;  %v1499_v4 = vmul.f32 2.0, %v624_v52 }
 0x123   :  { %v906_v55 = vpop.f32.mrb[3].mxu0  ;;  %v1503_v5 = vmul.f32 2.0, %v904_v53 }
 0x13d   :  { %v1202_v61 = vpop.f32.mrb[4].mxu1 }
 0x13e   :  { %v1482_v62 = vpop.f32.mrb[4].mxu0  ;;  %v1489_v63 = vrot.slane %v1202_v61, %v1488_v59  ;;  %v1204_v1 = vpop.f32.mrb[5].mxu1 }
 0x13f   :  { %v1497_v0 = vrot.slane %v1482_v62, %v1488_v59  ;;  %v1484_v2 = vpop.f32.mrb[5].mxu0 }
 0x140   :  { %v1490_v6 = vadd.f32 %v1489_v63, %v916_v57 }
 0x141   :  { %v1502_v7 = vadd.f32 %v1497_v0, %v916_v57  ;;  %v1498_v8 = vadd.f32 %v1497_v0, %v925_v60 }
 0x142   :  { %v1492_v9 = vsub.f32 %v1490_v6, %v1491_v3 }
 0x143   :  { %v1504_v10 = vsub.f32 %v1502_v7, %v1503_v5  ;;  %v1500_v11 = vsub.f32 %v1498_v8, %v1499_v4 }
 0x144   :  { %v1493_v12 = vmax.f32 %v1492_v9, 0.0 }
 0x145   :  { %v1505_v13 = vmax.f32 %v1504_v10, 0.0  ;;  %v1501_v14 = vmax.f32 %v1500_v11, 0.0 }
 0x146   :  { %v1506_v15 = vmul.f32 -0.5, %v1493_v12  ;;  %v1518_v16 = vmul.f32 -0.125, %v1493_v12  ;;  %v1530_v17 = vmul.f32 -0.005, %v1493_v12 }
 0x147   :  { %v1514_v18 = vmul.f32 -0.5, %v1505_v13  ;;  %v1526_v19 = vmul.f32 -0.125, %v1505_v13  ;;  %v1538_v20 = vmul.f32 -0.005, %v1505_v13  ;;  %v1510_v21 = vmul.f32 -0.5, %v1501_v14 }
 0x148   :  { %v1507_v22 = vmul.f32 1.442695, %v1506_v15  ;;  %v1519_v23 = vmul.f32 1.442695, %v1518_v16  ;;  %v1531_v24 = vmul.f32 1.442695, %v1530_v17 }
 0x149   :  { %v1515_v25 = vmul.f32 1.442695, %v1514_v18  ;;  %v1522_v26 = vmul.f32 -0.125, %v1501_v14  ;;  %v1527_v27 = vmul.f32 1.442695, %v1526_v19 }
 0x14a   :  { %1647 = vpow2.f32 %v1507_v22  ;;  %v1539_v28 = vmul.f32 1.442695, %v1538_v20  ;;  %v1534_v29 = vmul.f32 -0.005, %v1501_v14  ;;  %v1511_v30 = vmul.f32 1.442695, %v1510_v21 }
 0x14b   :  { %1649 = vpow2.f32 %v1519_v23  ;;  %v1523_v31 = vmul.f32 1.442695, %v1522_v26 }
 0x14c   :  { %1651 = vpow2.f32 %v1531_v24  ;;  %v1535_v32 = vmul.f32 1.442695, %v1534_v29 }
 0x14d   :  { %1653 = vpow2.f32 %v1515_v25 }
 0x14e   :  { %1655 = vpow2.f32 %v1527_v27 }
 0x14f   :  { %1657 = vpow2.f32 %v1539_v28 }
 0x150   :  { %1659 = vpow2.f32 %v1511_v30 }
 0x151   :  { %1661 = vpow2.f32 %v1523_v31 }
 0x152   :  { %1663 = vpow2.f32 %v1535_v32 }
 0x154   :  { %v1648_v33 = vpop.eup %1647 }
 0x155   :  { %v1650_v34 = vpop.eup %1649 }
 0x156   :  { %v1652_v35 = vpop.eup %1651  ;;  %v1521_v36 = vadd.f32 %v1650_v34, %v1648_v33 }
 0x157   :  { %v1654_v37 = vpop.eup %1653 }
 0x158   :  { %v1656_v38 = vpop.eup %1655  ;;  %v1533_v39 = vadd.f32 %v1652_v35, %v1521_v36 }
 0x159   :  { %v1658_v40 = vpop.eup %1657  ;;  %v1529_v41 = vadd.f32 %v1656_v38, %v1654_v37 }
 0x15a   :  { %v1660_v42 = vpop.eup %1659  ;;  %v1543_v43 = vsel %vm1542_vm0, %v1533_v39, 0.0 }
 0x15b   :  { %v1662_v44 = vpop.eup %1661  ;;  %v1541_v45 = vadd.f32 %v1658_v40, %v1529_v41  ;;  %1544 = vadd.xlane.f32.xlu1 %v1543_v43 }
 0x15c   :  { %v1525_v46 = vadd.f32 %v1662_v44, %v1660_v42  ;;  %v1664_v47 = vpop.eup %1663 }
 0x15d   :  { %v1566_v48 = vsel %vm1542_vm0, %v1541_v45, 0.0 }
 0x15e   :  { %1567 = vadd.xlane.f32.xlu0 %v1566_v48  ;;  %v1537_v49 = vadd.f32 %v1664_v47, %v1525_v46 }
 0x160   :  { %v1554_v50 = vsel %vm1542_vm0, %v1537_v49, 0.0 }
 0x161   :  { %1555 = vadd.xlane.f32.xlu1 %v1554_v50 }
 0x1e8   :  { %v1545_v51 = vpop.xlane.xlu1 %1544 }
 0x1e9   :  { %v1546_v52 = vrot.slane %v1545_v51, 4 }
 0x1eb   :  { %v1547_v53 = vadd.f32 %v1546_v52, %v1545_v51  ;;  %v1568_v54 = vpop.xlane.xlu0 %1567 }
 0x1ec   :  { %v1569_v55 = vrot.slane %v1568_v54, 4 }
 0x1ed   :  { %v1548_v56 = vrot.slane %v1547_v53, 2 }
 0x1ee   :  { %v1570_v57 = vadd.f32 %v1569_v55, %v1568_v54  ;;  %v1556_v58 = vpop.xlane.xlu1 %1555 }
 0x1ef   :  { %v1557_v59 = vrot.slane %v1556_v58, 4  ;;  %v1549_v60 = vadd.f32 %v1548_v56, %v1547_v53 }
 0x1f0   :  { %v1571_v61 = vrot.slane %v1570_v57, 2 }
 0x1f1   :  { %v1558_v62 = vadd.f32 %v1557_v59, %v1556_v58  ;;  %v1550_v63 = vrot.slane %v1549_v60, 1 }
 0x1f2   :  { %v1572_v0 = vadd.f32 %v1571_v61, %v1570_v57 }
 0x1f3   :  { %v1559_v1 = vrot.slane %v1558_v62, 2  ;;  %v1551_v2 = vadd.f32 %v1550_v63, %v1549_v60 }
 0x1f4   :  { %v1573_v4 = vrot.slane %v1572_v0, 1 }
 0x1f5   :  { %v1560_v3 = vadd.f32 %v1559_v1, %v1558_v62  ;;  %1634 = vpush %v1551_v2 }
 0x1f6   :  { %v1574_v7 = vadd.f32 %v1573_v4, %v1572_v0 }
 0x1f7   :  { %v1561_v5 = vrot.slane %v1560_v3, 1 }
 0x1f9   :  { %v1562_v6 = vadd.f32 %v1561_v5, %v1560_v3 }
 0x1fb   :  { %1636 = vpush %v1562_v6 }
 0x1fc   :  { %1638 = vpush %v1574_v7 }
 0x226   :  { %s1635_s1 = spop %1634 }
 0x227   :  { %s1553_s4 = smul.f32 0.015625, %s1635_s1 }
 0x22c   :  { %s1637_s5 = spop %1636 }
 0x22d   :  { %s1564_s6 = smul.f32 0.015625, %s1637_s5  ;;  %s1639_s7 = spop %1638 }
 0x22e   :  { %s1576_s9 = smul.f32 0.03125, %s1639_s7 }
 0x22f   :  { %s1565_s8 = sadd.f32 %s1564_s6, %s1553_s4 }
 0x231   :  { %s1577_s10 = ssub.f32 %s1565_s8, %s1576_s9 }
 0x233   :  { %s1578_s12 = smax.f32 %s1730_s11, %s1577_s10 }
 0x234   :  { %v1579_v8 = vstv %s1578_s12 }
 0x235   :  { %1665 = vrsqrt.f32 %v1579_v8  ;;  %vm1582_vm1 = vcmp.eq.f32.partialorder %v1579_v8, inf  ;;  %v1585_v11 = vand.u32 2147483648, %v1579_v8  ;;  %vm1584_vm2 = vcmp.eq.f32.partialorder %v1579_v8, 0.0 }
 0x23f   :  { %v1666_v9 = vpop.eup %1665 }
 0x240   :  { %v1581_v10 = vmul.f32 %v1666_v9, %v1579_v8 }
 0x242   :  { %v1583_v12 = vsel %vm1582_vm1, %v1579_v8, %v1581_v10 }
 0x243   :  { %v1586_v13 = vsel %vm1584_vm2, %v1585_v11, %v1583_v12 }
 0x244   :  { %1640 = vpush %v1586_v13 }
 0x275   :  { %s1641_s13 = spop %1640 }
 0x276   :  { %1589 = sst [smem:[#allocation7]] %s1641_s13 }
 0x277   :  { %1720 = shalt.err (!%p1717_p4)
}
 0x278   :  { %s1731_s21 = smov [#allocation7]  }
 0x279   :  { %1597 = dma.smem_to_hbm %s1731_s21, 16, %s1868_s2, [#allocation4]  }
 0x27a   :  { %1725 = dma.done.wait [#allocation4], 16  }
 0x27b   :  { %1726 = vsyncadd [#allocation4], 4294967280 }
 0x27c   :  { %1601 = sfence }
 0x27d   :  { %1602 = vsyncpa [#allocation3], 1 }
 0x27e   :  { %1603 = vsyncpa [#allocation6], 1 }
 0x27f   :  { %1604 = vsyncpa [#allocation4], 1 }

</bundles_post_ra>
